<compile_context>
chip_gen: v7x
topology: tpu7x:2x2x1
jax: 0.10.0
libtpu: 0.0.40
codegen_flags: <defaults>
</compile_context>

<pallas_src>
import functools

import jax
import jax.numpy as jnp
from jax.experimental import pallas as pl
from jax.experimental.pallas import tpu as pltpu


def _round_up(n, m):
    return ((n + m - 1) // m) * m


def _default_chunk_t(T, bb, ep):
    """Largest divisor of T giving >=2 chunks while fitting a VMEM budget."""
    # ~8 bytes/element: 2x bf16 x double-buffer + 1x f32 u scratch.
    budget_elems = (24 << 20) // 8
    max_ct = max(1, budget_elems // max(1, bb * ep))
    best = 1
    for d in range(1, T + 1):
        if T % d == 0 and d <= max_ct and T // d >= 2:
            best = d
    return best


def _qry_tower_kernel(x_ref, wih_ref, whh_ref, b_ref, wfc_ref, bfc_ref,
                      out_ref, h_scr, u_scr, *, chunk_t, unroll):
    """One grid step == one (batch block, chunk of `chunk_t` timesteps).

    x_ref:   (chunk_t, Bb, Ep) bf16   time-major chunk for this batch block
    wih/wfc: (Ep, Ep) bf16 pre-transposed;  whh: (Ep, Ep) f32;  biases (1, Ep) f32
    h_scr:   (Bb, Ep) f32 hidden state, persists across chunk steps
    u_scr:   (chunk_t, Bb, Ep) f32 hoisted input projection for the chunk
    """
    c = pl.program_id(1)

    @pl.when(c == 0)
    def _():
        h_scr[...] = jnp.zeros_like(h_scr)

    ct, bb, ep = x_ref.shape

    # Hoisted (non-recurrent) input projection for the whole chunk: a single
    # (chunk_t*Bb, Ep) @ (Ep, Ep) GEMM, bf16 operands / f32 accumulate, RNN
    # biases folded in once. Parked in VMEM scratch so the recurrence below
    # only keeps one (Bb, Ep) u_t tile live at a time (bounded vreg pressure).
    x2 = x_ref[...].reshape(ct * bb, ep)
    u = jnp.dot(x2, wih_ref[...], preferred_element_type=jnp.float32) + b_ref[...]
    u_scr[...] = u.reshape(ct, bb, ep)

    whh = whh_ref[...]  # f32: the recurrent path stays full precision

    def step(t, h):
        u_t = u_scr[t]  # (Bb, Ep) load from VMEM scratch
        return jnp.tanh(
            jnp.dot(h, whh, preferred_element_type=jnp.float32) + u_t)

    h = jax.lax.fori_loop(0, chunk_t, step, h_scr[...], unroll=unroll)
    h_scr[...] = h

    @pl.when(c == pl.num_programs(1) - 1)
    def _():
        out_ref[...] = (
            jnp.dot(h.astype(jnp.bfloat16), wfc_ref[...],
                    preferred_element_type=jnp.float32)
            + bfc_ref[...]
        ).astype(out_ref.dtype)


def qry_tower_forward(x, params, *, chunk_t=None, batch_block=None):
    """x: (B, T, E) float32. params: dict of PyTorch-shaped weights."""
    B, T, E = x.shape
    Bp = _round_up(B, 8)          # pad batch to full sublanes
    Ep = _round_up(E, 128)        # pad embed dim to full lanes (lane-dense out)

    if batch_block is None:
        # >=2 batch blocks when there are enough sublane groups so the
        # "parallel" batch axis can occupy both v7x TensorCores.
        batch_block = Bp // 2 if (Bp >= 16 and (Bp // 8) % 2 == 0) else Bp
    assert Bp % batch_block == 0
    num_bb = Bp // batch_block

    if chunk_t is None:
        chunk_t = _default_chunk_t(T, batch_block, Ep)
    assert T % chunk_t == 0, "chunk_t must divide T"
    num_chunks = T // chunk_t
    unroll = max(d for d in (8, 4, 2, 1) if chunk_t % d == 0)

    # x prep: cast to bf16 + zero-pad + time-major transpose. Single fused HBM
    # pass under jit; kernel consumes bf16 directly (half the DMA bytes).
    x_pad = jnp.pad(x.astype(jnp.bfloat16),
                    ((0, Bp - B), (0, 0), (0, Ep - E)))      # (Bp, T, Ep)
    x_tbe = jnp.transpose(x_pad, (1, 0, 2))                  # (T, Bp, Ep)

    def pad_w(w, dtype):  # (E,E) PyTorch weight -> (Ep,Ep) transposed (x @ W)
        return jnp.pad(w.T, ((0, Ep - E), (0, Ep - E))).astype(dtype)

    wih_t = pad_w(params["w_ih"], jnp.bfloat16)
    whh_t = pad_w(params["w_hh"], jnp.float32)
    wfc_t = pad_w(params["w_fc"], jnp.bfloat16)
    b_rnn = jnp.pad(params["b_ih"] + params["b_hh"],
                    (0, Ep - E)).reshape(1, Ep).astype(jnp.float32)
    b_fc = jnp.pad(params["b_fc"], (0, Ep - E)).reshape(1, Ep).astype(jnp.float32)

    # Explicit VMEM budget (v5e scoped default is 16 MiB; v7x physical is 64 MiB).
    x_buf = chunk_t * batch_block * Ep * 2         # bf16 chunk, double-buffered
    u_buf = chunk_t * batch_block * Ep * 4         # f32 scratch
    w_buf = 2 * Ep * Ep * 2 + Ep * Ep * 4          # wih+wfc bf16, whh f32 (1-buffered)
    misc = 2 * Ep * 4 + 3 * batch_block * Ep * 4   # biases, h scratch, out dbl-buf
    est = 2 * x_buf + u_buf + w_buf + misc
    vmem_limit = int(min(max(2 * est, 32 << 20), 64 << 20))

    grid_spec = pltpu.PrefetchScalarGridSpec(
        num_scalar_prefetch=0,
        grid=(num_bb, num_chunks),   # chunk (recurrence) axis innermost
        in_specs=[
            pl.BlockSpec((chunk_t, batch_block, Ep),
                         lambda b, c: (c, b, 0)),                      # x chunk
            pl.BlockSpec((Ep, Ep), lambda b, c: (0, 0),
                         pipeline_mode=pl.Buffered(1)),                # W_ih^T
            pl.BlockSpec((Ep, Ep), lambda b, c: (0, 0),
                         pipeline_mode=pl.Buffered(1)),                # W_hh^T
            pl.BlockSpec((1, Ep), lambda b, c: (0, 0),
                         pipeline_mode=pl.Buffered(1)),                # b_ih+b_hh
            pl.BlockSpec((Ep, Ep), lambda b, c: (0, 0),
                         pipeline_mode=pl.Buffered(1)),                # W_fc^T
            pl.BlockSpec((1, Ep), lambda b, c: (0, 0),
                         pipeline_mode=pl.Buffered(1)),                # b_fc
        ],
        out_specs=pl.BlockSpec((batch_block, Ep), lambda b, c: (b, 0)),
        scratch_shapes=[
            pltpu.VMEM((batch_block, Ep), jnp.float32),                # h
            pltpu.VMEM((chunk_t, batch_block, Ep), jnp.float32),       # u chunk
        ],
    )

    out_pad = pl.pallas_call(
        functools.partial(_qry_tower_kernel, chunk_t=chunk_t, unroll=unroll),
        out_shape=jax.ShapeDtypeStruct((Bp, Ep), jnp.float32),
        grid_spec=grid_spec,
        compiler_params=pltpu.CompilerParams(
            dimension_semantics=("parallel", "arbitrary"),
            vmem_limit_bytes=vmem_limit),
    )(x_tbe, wih_t, whh_t, b_rnn, wfc_t, b_fc)

    return out_pad[:B, :E]


def qry_tower_reference(x, params):
    """Pure-JAX reference (mirrors PyTorch nn.RNN + nn.Linear), all f32."""
    B, T, E = x.shape

    def step(h, x_t):
        h_new = jnp.tanh(
            jnp.dot(x_t, params["w_ih"].T, precision="highest")
            + params["b_ih"]
            + jnp.dot(h, params["w_hh"].T, precision="highest")
            + params["b_hh"]
        )
        return h_new, None

    h0 = jnp.zeros((B, E), jnp.float32)
    h_final, _ = jax.lax.scan(step, h0, jnp.transpose(x, (1, 0, 2)))
    return jnp.dot(h_final, params["w_fc"].T, precision="highest") + params["b_fc"]


def init_params(key, embed_dim):
    """Deterministic PyTorch-style uniform(-1/sqrt(E), 1/sqrt(E)) init."""
    bound = 1.0 / jnp.sqrt(jnp.float32(embed_dim))
    ks = jax.random.split(key, 6)
    u = lambda k, shape: jax.random.uniform(
        k, shape, jnp.float32, minval=-bound, maxval=bound)
    return {
        "w_ih": u(ks[0], (embed_dim, embed_dim)),
        "w_hh": u(ks[1], (embed_dim, embed_dim)),
        "b_ih": u(ks[2], (embed_dim,)),
        "b_hh": u(ks[3], (embed_dim,)),
        "w_fc": u(ks[4], (embed_dim, embed_dim)),
        "b_fc": u(ks[5], (embed_dim,)),
    }


if __name__ == "__main__":
    B, T, E = 2, 8, 32
    key = jax.random.PRNGKey(0)
    k_x, k_p = jax.random.split(key)
    x = jax.random.normal(k_x, (B, T, E), jnp.float32)
    params = init_params(k_p, E)

    fwd = jax.jit(qry_tower_forward)  # fuses the cast/pad/transpose x prep
    out = jax.block_until_ready(fwd(x, params))

    ref = qry_tower_reference(x, params)
    assert out.shape == (B, E)
    max_err = jnp.max(jnp.abs(out - ref))
    # bf16 operands on the non-recurrent GEMMs (per perf review) -> slightly
    # looser tolerance than an all-f32 kernel; the recurrent path stays f32.
    assert jnp.allclose(out, ref, rtol=2e-2, atol=2e-2), (
        f"max abs err = {max_err}")

    print("KERNEL_OK")
</pallas_src>

<mosaic_0001>
module attributes {stable_mosaic.version = 11 : i64} {
  func.func @_qry_tower_kernel(%arg0: i32, %arg1: i32, %arg2: memref<4x8x128xbf16, #tpu.memory_space<vmem>>, %arg3: memref<128x128xbf16, #tpu.memory_space<vmem>>, %arg4: memref<128x128xf32, #tpu.memory_space<vmem>>, %arg5: memref<1x128xf32, #tpu.memory_space<vmem>>, %arg6: memref<128x128xbf16, #tpu.memory_space<vmem>>, %arg7: memref<1x128xf32, #tpu.memory_space<vmem>>, %arg8: memref<8x128xf32, #tpu.memory_space<vmem>>, %arg9: memref<8x128xf32, #tpu.memory_space<vmem>>, %arg10: memref<4x8x128xf32, #tpu.memory_space<vmem>>) attributes {dimension_semantics = [#tpu.dimension_semantics<parallel>, #tpu.dimension_semantics<arbitrary>], iteration_bounds = array<i64: 1, 2>, scalar_prefetch = 0 : i64, scratch_operands = 2 : i64, tpu.core_type = #tpu.core_type<tc>, window_params = [{transform_indices = @transform_0, window_bounds = array<i64: 4, 8, 128>}, {pipeline_mode = #tpu.pipeline_mode<synchronous>, transform_indices = @transform_1, window_bounds = array<i64: 128, 128>}, {pipeline_mode = #tpu.pipeline_mode<synchronous>, transform_indices = @transform_2, window_bounds = array<i64: 128, 128>}, {pipeline_mode = #tpu.pipeline_mode<synchronous>, transform_indices = @transform_3, window_bounds = array<i64: 1, 128>}, {pipeline_mode = #tpu.pipeline_mode<synchronous>, transform_indices = @transform_4, window_bounds = array<i64: 128, 128>}, {pipeline_mode = #tpu.pipeline_mode<synchronous>, transform_indices = @transform_5, window_bounds = array<i64: 1, 128>}, {transform_indices = @transform_6, window_bounds = array<i64: 8, 128>}]} {
    %c0_i32 = arith.constant 0 : i32
    %0 = arith.cmpi eq, %arg1, %c0_i32 : i32
    %1 = arith.extui %0 : i1 to i32
    %c0_i32_0 = arith.constant 0 : i32
    %2 = arith.cmpi ne, %1, %c0_i32_0 : i32
    scf.if %2 {
      %cst_31 = arith.constant 0.000000e+00 : f32
      %42 = vector.broadcast %cst_31 : f32 to vector<8x128xf32>
      %c0_32 = arith.constant 0 : index
      %c0_33 = arith.constant 0 : index
      %43 = vector.load %arg9[%c0_32, %c0_33] : memref<8x128xf32, #tpu.memory_space<vmem>>, vector<8x128xf32>
      tpu.vector_store %arg9[%c0_32, %c0_33], %42 {strides = array<i32>} : memref<8x128xf32, #tpu.memory_space<vmem>>, vector<8x128xf32>,
    } else {
    }
    %c0 = arith.constant 0 : index
    %c0_1 = arith.constant 0 : index
    %c0_2 = arith.constant 0 : index
    %3 = vector.load %arg2[%c0, %c0_1, %c0_2] : memref<4x8x128xbf16, #tpu.memory_space<vmem>>, vector<4x8x128xbf16>
    %4 = vector.shape_cast %3 : vector<4x8x128xbf16> to vector<32x128xbf16>
    %c0_3 = arith.constant 0 : index
    %c0_4 = arith.constant 0 : index
    %5 = vector.load %arg3[%c0_3, %c0_4] : memref<128x128xbf16, #tpu.memory_space<vmem>>, vector<128x128xbf16>
    %cst = arith.constant dense<0.000000e+00> : vector<32x128xf32>
    %6 = tpu.matmul %4, %5, %cst {dimension_numbers = #tpu.dot_dimension_numbers<[1], [0], [0], [1], [0, 0, 1, 1], [], []>} : vector<32x128xbf16>, vector<128x128xbf16>, vector<32x128xf32> -> vector<32x128xf32>
    %c0_5 = arith.constant 0 : index
    %c0_6 = arith.constant 0 : index
    %7 = vector.load %arg5[%c0_5, %c0_6] : memref<1x128xf32, #tpu.memory_space<vmem>>, vector<1x128xf32>
    %8 = vector.broadcast %7 : vector<1x128xf32> to vector<32x128xf32>
    %9 = arith.addf %6, %8 : vector<32x128xf32>
    %10 = vector.shape_cast %9 : vector<32x128xf32> to vector<4x8x128xf32>
    %c0_7 = arith.constant 0 : index
    %c0_8 = arith.constant 0 : index
    %c0_9 = arith.constant 0 : index
    %11 = vector.load %arg10[%c0_7, %c0_8, %c0_9] : memref<4x8x128xf32, #tpu.memory_space<vmem>>, vector<4x8x128xf32>
    tpu.vector_store %arg10[%c0_7, %c0_8, %c0_9], %10 {strides = array<i32>} : memref<4x8x128xf32, #tpu.memory_space<vmem>>, vector<4x8x128xf32>,
    %c0_10 = arith.constant 0 : index
    %c0_11 = arith.constant 0 : index
    %12 = vector.load %arg4[%c0_10, %c0_11] : memref<128x128xf32, #tpu.memory_space<vmem>>, vector<128x128xf32>
    %c0_12 = arith.constant 0 : index
    %c0_13 = arith.constant 0 : index
    %13 = vector.load %arg9[%c0_12, %c0_13] : memref<8x128xf32, #tpu.memory_space<vmem>>, vector<8x128xf32>
    %c0_i32_14 = arith.constant 0 : i32
    %14 = arith.index_cast %c0_i32_14 : i32 to index
    %c0_15 = arith.constant 0 : index
    %c0_16 = arith.constant 0 : index
    %15 = vector.load %arg10[%14, %c0_15, %c0_16] : memref<4x8x128xf32, #tpu.memory_space<vmem>>, vector<1x8x128xf32>
    %16 = vector.shape_cast %15 : vector<1x8x128xf32> to vector<8x128xf32>
    %cst_17 = arith.constant dense<0.000000e+00> : vector<8x128xf32>
    %17 = tpu.matmul %13, %12, %cst_17 {dimension_numbers = #tpu.dot_dimension_numbers<[1], [0], [0], [1], [0, 0, 1, 1], [], []>} : vector<8x128xf32>, vector<128x128xf32>, vector<8x128xf32> -> vector<8x128xf32>
    %18 = arith.addf %17, %16 : vector<8x128xf32>
    %19 = math.tanh %18 : vector<8x128xf32>
    %c1_i32 = arith.constant 1 : i32
    %20 = arith.index_cast %c1_i32 : i32 to index
    %c0_18 = arith.constant 0 : index
    %c0_19 = arith.constant 0 : index
    %21 = vector.load %arg10[%20, %c0_18, %c0_19] : memref<4x8x128xf32, #tpu.memory_space<vmem>>, vector<1x8x128xf32>
    %22 = vector.shape_cast %21 : vector<1x8x128xf32> to vector<8x128xf32>
    %cst_20 = arith.constant dense<0.000000e+00> : vector<8x128xf32>
    %23 = tpu.matmul %19, %12, %cst_20 {dimension_numbers = #tpu.dot_dimension_numbers<[1], [0], [0], [1], [0, 0, 1, 1], [], []>} : vector<8x128xf32>, vector<128x128xf32>, vector<8x128xf32> -> vector<8x128xf32>
    %24 = arith.addf %23, %22 : vector<8x128xf32>
    %25 = math.tanh %24 : vector<8x128xf32>
    %c2_i32 = arith.constant 2 : i32
    %26 = arith.index_cast %c2_i32 : i32 to index
    %c0_21 = arith.constant 0 : index
    %c0_22 = arith.constant 0 : index
    %27 = vector.load %arg10[%26, %c0_21, %c0_22] : memref<4x8x128xf32, #tpu.memory_space<vmem>>, vector<1x8x128xf32>
    %28 = vector.shape_cast %27 : vector<1x8x128xf32> to vector<8x128xf32>
    %cst_23 = arith.constant dense<0.000000e+00> : vector<8x128xf32>
    %29 = tpu.matmul %25, %12, %cst_23 {dimension_numbers = #tpu.dot_dimension_numbers<[1], [0], [0], [1], [0, 0, 1, 1], [], []>} : vector<8x128xf32>, vector<128x128xf32>, vector<8x128xf32> -> vector<8x128xf32>
    %30 = arith.addf %29, %28 : vector<8x128xf32>
    %31 = math.tanh %30 : vector<8x128xf32>
    %c3_i32 = arith.constant 3 : i32
    %32 = arith.index_cast %c3_i32 : i32 to index
    %c0_24 = arith.constant 0 : index
    %c0_25 = arith.constant 0 : index
    %33 = vector.load %arg10[%32, %c0_24, %c0_25] : memref<4x8x128xf32, #tpu.memory_space<vmem>>, vector<1x8x128xf32>
    %34 = vector.shape_cast %33 : vector<1x8x128xf32> to vector<8x128xf32>
    %cst_26 = arith.constant dense<0.000000e+00> : vector<8x128xf32>
    %35 = tpu.matmul %31, %12, %cst_26 {dimension_numbers = #tpu.dot_dimension_numbers<[1], [0], [0], [1], [0, 0, 1, 1], [], []>} : vector<8x128xf32>, vector<128x128xf32>, vector<8x128xf32> -> vector<8x128xf32>
    %36 = arith.addf %35, %34 : vector<8x128xf32>
    %37 = math.tanh %36 : vector<8x128xf32>
    %c4_i32 = arith.constant 4 : i32
    %c0_27 = arith.constant 0 : index
    %c0_28 = arith.constant 0 : index
    %38 = vector.load %arg9[%c0_27, %c0_28] : memref<8x128xf32, #tpu.memory_space<vmem>>, vector<8x128xf32>
    tpu.vector_store %arg9[%c0_27, %c0_28], %37 {strides = array<i32>} : memref<8x128xf32, #tpu.memory_space<vmem>>, vector<8x128xf32>,
    %c1_i32_29 = arith.constant 1 : i32
    %39 = arith.cmpi eq, %arg1, %c1_i32_29 : i32
    %40 = arith.extui %39 : i1 to i32
    %c0_i32_30 = arith.constant 0 : i32
    %41 = arith.cmpi ne, %40, %c0_i32_30 : i32
    scf.if %41 {
      %42 = arith.truncf %37 : vector<8x128xf32> to vector<8x128xbf16>
      %c0_31 = arith.constant 0 : index
      %c0_32 = arith.constant 0 : index
      %43 = vector.load %arg6[%c0_31, %c0_32] : memref<128x128xbf16, #tpu.memory_space<vmem>>, vector<128x128xbf16>
      %cst_33 = arith.constant dense<0.000000e+00> : vector<8x128xf32>
      %44 = tpu.matmul %42, %43, %cst_33 {dimension_numbers = #tpu.dot_dimension_numbers<[1], [0], [0], [1], [0, 0, 1, 1], [], []>} : vector<8x128xbf16>, vector<128x128xbf16>, vector<8x128xf32> -> vector<8x128xf32>
      %c0_34 = arith.constant 0 : index
      %c0_35 = arith.constant 0 : index
      %45 = vector.load %arg7[%c0_34, %c0_35] : memref<1x128xf32, #tpu.memory_space<vmem>>, vector<1x128xf32>
      %46 = vector.broadcast %45 : vector<1x128xf32> to vector<8x128xf32>
      %47 = arith.addf %44, %46 : vector<8x128xf32>
      %c0_36 = arith.constant 0 : index
      %c0_37 = arith.constant 0 : index
      %48 = vector.load %arg8[%c0_36, %c0_37] : memref<8x128xf32, #tpu.memory_space<vmem>>, vector<8x128xf32>
      tpu.vector_store %arg8[%c0_36, %c0_37], %47 {strides = array<i32>} : memref<8x128xf32, #tpu.memory_space<vmem>>, vector<8x128xf32>,
    } else {
    }
    return
  }
  func.func @transform_0(%arg0: i32, %arg1: i32) -> (i32, i32, i32) {
    %c0_i32 = arith.constant 0 : i32
    %c0_i32_0 = arith.constant 0 : i32
    return %arg1, %arg0, %c0_i32 : i32, i32, i32
  }
  func.func @transform_1(%arg0: i32, %arg1: i32) -> (i32, i32) {
    %c0_i32 = arith.constant 0 : i32
    %c0_i32_0 = arith.constant 0 : i32
    %c0_i32_1 = arith.constant 0 : i32
    return %c0_i32, %c0_i32_0 : i32, i32
  }
  func.func @transform_2(%arg0: i32, %arg1: i32) -> (i32, i32) {
    %c0_i32 = arith.constant 0 : i32
    %c0_i32_0 = arith.constant 0 : i32
    %c0_i32_1 = arith.constant 0 : i32
    return %c0_i32, %c0_i32_0 : i32, i32
  }
  func.func @transform_3(%arg0: i32, %arg1: i32) -> (i32, i32) {
    %c0_i32 = arith.constant 0 : i32
    %c0_i32_0 = arith.constant 0 : i32
    %c0_i32_1 = arith.constant 0 : i32
    return %c0_i32, %c0_i32_0 : i32, i32
  }
  func.func @transform_4(%arg0: i32, %arg1: i32) -> (i32, i32) {
    %c0_i32 = arith.constant 0 : i32
    %c0_i32_0 = arith.constant 0 : i32
    %c0_i32_1 = arith.constant 0 : i32
    return %c0_i32, %c0_i32_0 : i32, i32
  }
  func.func @transform_5(%arg0: i32, %arg1: i32) -> (i32, i32) {
    %c0_i32 = arith.constant 0 : i32
    %c0_i32_0 = arith.constant 0 : i32
    %c0_i32_1 = arith.constant 0 : i32
    return %c0_i32, %c0_i32_0 : i32, i32
  }
  func.func @transform_6(%arg0: i32, %arg1: i32) -> (i32, i32) {
    %c0_i32 = arith.constant 0 : i32
    %c0_i32_0 = arith.constant 0 : i32
    return %arg0, %c0_i32 : i32, i32
  }
}

</mosaic_0001>

<bundles_post_ra>
// kernel: qry_tower_forward.1
= control target key start
LH: loop header
LB: loop body
LE: loop exit
PB: predicated region body
PF: predicated region fallthrough
CT: control target
= control target key end

     0   :  { %s1424_s21 = smov 0   ;;  %s1426_s22 = smov 0   ;;  %s1656_s0 = inlined_call_operand.vmem [shape: bf16[8,8,128], index: 0, kind: input, shape index: {}]   ;;  %s1657_s1 = inlined_call_operand.vmem [shape: bf16[128,128], index: 1, kind: input, shape index: {}]   ;;  %s1658_s2 = inlined_call_operand.vmem [shape: f32[128,128], index: 2, kind: input, shape index: {}]   ;;  %s1659_s3 = inlined_call_operand.vmem [shape: f32[1,128], index: 3, kind: input, shape index: {}]   ;;  %s1660_s4 = inlined_call_operand.vmem [shape: bf16[128,128], index: 4, kind: input, shape index: {}]   ;;  %s1661_s5 = inlined_call_operand.vmem [shape: f32[1,128], index: 5, kind: input, shape index: {}]   ;;  %s1662_s6 = inlined_call_operand.vmem [shape: f32[8,128], index: 6, kind: output, shape index: {}]  }
   0x1   :  { %s1428_s23 = smov 0  }
   0x2 LB: > { %s25_s24 = sadd.s32 1, %s1377_s22  ;;  %p912_p0 = scmp.ge.s32.totalorder %s1381_s23, 1  ;;  %s1381_s23 = sphi %s1428_s23, %s16_s23   ;;  %s1377_s22 = sphi %s1426_s22, %s1664_s22   ;;  %s1373_s21 = sphi %s1424_s21, %s1663_s21  }
   0x3   : > { %p26_p1 = scmp.ge.s32.totalorder %s25_s24, 2  ;;  %p230_p2 = scmp.lt.s32.totalorder %s1381_s23, 3 }
   0x5   : > { %s1666_s24 = smov (%p26_p1, %s25_s24), 0  ;;  %p231_p3 = pnand %p912_p0, %p230_p2 }
   0x6   : > { %s913_s25 = sshll.u32 (!%p231_p3), %s1373_s21, 2  ;;  %p915_p5 = scmp.ne.s32.totalorder (!%p231_p3), %s1373_s21, 0 }
   0x7   : > { %234 = sbr.rel (%p231_p3) target bundleno = 1174 (0x496), region = 44  ;;  %p263_p4 = scmp.lt.s32.totalorder (!%p231_p3), %s913_s25, 7 }
   0xe   : > { %s1668_s25 = smov (!%p263_p4, %s913_s25), 7  ;;  %279 = sbr.rel (%p915_p5) target bundleno = 21 (0x15), region = 48 }
   0xf   : > { %s914_s26 = sshll.u32 %s1668_s25, 2  ;;  %v1383_v0 = vmov (!%p915_p5), 0.0  }
  0x10   : > { %s1448_s29 = scalar_lea.vmem %s1656_s0, %s914_s26  ;;  %280 = vst [vmem:[#allocation2] sm:$0xff] (!%p915_p5), %v1383_v0 }
  0x15 PF: > { %v1333_v1 = vld [vmem:[%s1657_s1] sm:$0xff]   ;;  %v1384_v2 = vmov 0.0|0.0   ;;  %v422_v4 = vld [vmem:[%s1658_s2 + $0x8] sm:$0xff]  ;;  %v423_v7 = vld [vmem:[%s1658_s2 + $0x10] sm:$0xff]  ;;  %vm1385_vm0 = vmmov 0   ;;  %v1386_v8 = vmov 0.0  }
  0x16   : > { %1207 = vmatprep.subr.bf16.mxu1 %v1384_v2  ;;  %v421_v3 = vld [vmem:[%s1658_s2] sm:$0xff]  ;;  %1027 = vmatprep.subr.bf16.mxu0 %v1333_v1  ;;  %v1334_v6 = vld [vmem:[%s1657_s1 + $0x8] sm:$0xff]   ;;  %v424_v9 = vld [vmem:[%s1658_s2 + $0x18] sm:$0xff]  ;;  %p927_p6 = scmp.ne.s32.totalorder %s1373_s21, 1 }
  0x17   : > { %v1461_v5 = vpack.c.bf16 %v422_v4, %v421_v3  ;;  %1079 = vmatprep.mubr.msk.f32.mxu1 %vm1385_vm0, %v1386_v8  ;;  %1028 = vmatpush3.bf16.msra.mxu0 %v1333_v1  ;;  %v1475_v10 = vpack.c.bf16 %v424_v9, %v423_v7  ;;  %v1335_v11 = vld [vmem:[%s1657_s1 + $0x10] sm:$0xff]   ;;  %v425_v12 = vld [vmem:[%s1658_s2 + $0x20] sm:$0xff]  ;;  %v426_v13 = vld [vmem:[%s1658_s2 + $0x28] sm:$0xff]  ;;  %v1387_v0 = vmov (!%p927_p6), 0.0   ;;  %vm1388_vm1 = vmmov (!%p927_p6), 0  }
  0x18   : > { %1029 = vmatprep.subr.bf16.mxu0 %v1334_v6  ;;  %v1488_v14 = vpack.c.bf16 %v426_v13, %v425_v12  ;;  %v1336_v15 = vld [vmem:[%s1657_s1 + $0x18] sm:$0xff]   ;;  %v427_v16 = vld [vmem:[%s1658_s2 + $0x30] sm:$0xff]  ;;  %v1337_v18 = vld [vmem:[%s1657_s1 + $0x20] sm:$0xff]  }
  0x19   : > { %1209 = vmatpush3.bf16.msra.mxu1 %v1461_v5  ;;  %v428_v17 = vld [vmem:[%s1658_s2 + $0x38] sm:$0xff]  ;;  %v429_v20 = vld [vmem:[%s1658_s2 + $0x40] sm:$0xff]  ;;  %v430_v21 = vld [vmem:[%s1658_s2 + $0x48] sm:$0xff] }
  0x1a   : > { %1210 = vmatprep.subr.bf16.mxu1 %v1384_v2  ;;  %v1504_v19 = vpack.c.bf16 %v428_v17, %v427_v16  ;;  %v1341_v22 = vld [vmem:[%s1448_s29] sm:$0xff]   ;;  %v1515_v23 = vpack.c.bf16 %v430_v21, %v429_v20  ;;  %v1338_v24 = vld [vmem:[%s1657_s1 + $0x28] sm:$0xff]   ;;  %v431_v25 = vld [vmem:[%s1658_s2 + $0x50] sm:$0xff] }
  0x1b   : > { %1030 = vmatpush3.bf16.msra.mxu0 %v1334_v6  ;;  %1043 = vmatprep.mubr.bf16.mxu0 %v1341_v22  ;;  %v432_v26 = vld [vmem:[%s1658_s2 + $0x58] sm:$0xff]  ;;  %v1339_v28 = vld [vmem:[%s1657_s1 + $0x30] sm:$0xff]   ;;  %v433_v29 = vld [vmem:[%s1658_s2 + $0x60] sm:$0xff] }
  0x1c   : > { %1031 = vmatprep.subr.bf16.mxu0 %v1335_v11  ;;  %v1528_v27 = vpack.c.bf16 %v432_v26, %v431_v25  ;;  %v434_v30 = vld [vmem:[%s1658_s2 + $0x68] sm:$0xff]  ;;  %v1340_v32 = vld [vmem:[%s1657_s1 + $0x38] sm:$0xff]   ;;  %v435_v33 = vld [vmem:[%s1658_s2 + $0x70] sm:$0xff] }
  0x1d   : > { %1212 = vmatpush3.bf16.msra.mxu1 %v1475_v10  ;;  %v1541_v31 = vpack.c.bf16 %v434_v30, %v433_v29  ;;  %v436_v34 = vld [vmem:[%s1658_s2 + $0x78] sm:$0xff]  ;;  %v1342_v36 = vld [vmem:[%s1448_s29 + $0x8] sm:$0xff]   ;;  %v437_v37 = vld [vmem:[#allocation2] sm:$0xff] }
  0x1e   : > { %1213 = vmatprep.subr.bf16.mxu1 %v1384_v2  ;;  %v1554_v35 = vpack.c.bf16 %v436_v34, %v435_v33  ;;  %v916_v38 = vld [vmem:[%s1659_s3] ss:$0 sm:$0xff]  ;;  %v1352_v1 = vld [vmem:[%s1660_s4 + $0x8] sm:$0xff] (!%p927_p6)   ;;  %v1354_v3 = vld [vmem:[%s1660_s4 + $0x18] sm:$0xff] (!%p927_p6)  }
  0x1f   : > { %1032 = vmatpush3.bf16.msra.mxu0 %v1335_v11  ;;  %v1351_v63 = vld [vmem:[%s1660_s4] sm:$0xff] (!%p927_p6)   ;;  %v1357_v6 = vld [vmem:[%s1660_s4 + $0x30] sm:$0xff] (!%p927_p6)   ;;  %v1358_v7 = vld [vmem:[%s1660_s4 + $0x38] sm:$0xff] (!%p927_p6)  }
  0x20   : > { %1033 = vmatprep.subr.bf16.mxu0 %v1336_v15  ;;  %v1355_v4 = vld [vmem:[%s1660_s4 + $0x20] sm:$0xff] (!%p927_p6)  }
  0x21   : > { %1215 = vmatpush3.bf16.msra.mxu1 %v1488_v14  ;;  %v928_v9 = vld [vmem:[%s1661_s5] ss:$0 sm:$0xff] (!%p927_p6) }
  0x22   : > { %1216 = vmatprep.subr.bf16.mxu1 %v1384_v2 }
  0x23   : > { %1034 = vmatpush3.bf16.msra.mxu0 %v1336_v15 }
  0x24   : > { %1035 = vmatprep.subr.bf16.mxu0 %v1337_v18 }
  0x25   : > { %1218 = vmatpush3.bf16.msra.mxu1 %v1504_v19 }
  0x26   : > { %1219 = vmatprep.subr.bf16.mxu1 %v1384_v2 }
  0x27   : > { %1036 = vmatpush3.bf16.msra.mxu0 %v1337_v18 }
  0x28   : > { %1037 = vmatprep.subr.bf16.mxu0 %v1338_v24 }
  0x29   : > { %1221 = vmatpush3.bf16.msra.mxu1 %v1515_v23 }
  0x2a   : > { %1222 = vmatprep.subr.bf16.mxu1 %v1384_v2 }
  0x2b   : > { %1038 = vmatpush3.bf16.msra.mxu0 %v1338_v24 }
  0x2c   : > { %1039 = vmatprep.subr.bf16.mxu0 %v1339_v28 }
  0x2d   : > { %1224 = vmatpush3.bf16.msra.mxu1 %v1528_v27 }
  0x2e   : > { %1225 = vmatprep.subr.bf16.mxu1 %v1384_v2 }
  0x2f   : > { %1040 = vmatpush3.bf16.msra.mxu0 %v1339_v28 }
  0x30   : > { %1041 = vmatprep.subr.bf16.mxu0 %v1340_v32 }
  0x31   : > { %1227 = vmatpush3.bf16.msra.mxu1 %v1541_v31 }
  0x32   : > { %1228 = vmatprep.subr.bf16.mxu1 %v1384_v2 }
  0x33   : > { %1042 = vmatpush3.bf16.msra.mxu0 %v1340_v32 }
  0x34   : > { %1231 = vmatprep.subr.bf16.mxu0 %v1384_v2 }
  0x35   : > { %1230 = vmatpush3.bf16.msra.mxu1 %v1554_v35 }
  0x36   : > { %1255 = vmatprep.subr.bf16.mxu1 %v1384_v2  ;;  %1044 = vmatmul.mubr.bf16.vlgmr.msra.gmra.mrb[0].mxu0 %v1342_v36 }
  0x37   : > { %1233 = vmatpush3.bf16.msra.mxu0 %v1461_v5  ;;  %1114 = vmatprep.mubr.msk.f32.mxu0 %vm1385_vm0, %v1386_v8 }
  0x38   : > { %1080 = vmatmul.mubr.f32.vlgmr.msra.gmra.mrb[0].mxu1 %v437_v37  ;;  %1234 = vmatprep.subr.bf16.mxu0 %v1384_v2 }
  0x39   : > { %1257 = vmatpush3.bf16.msra.mxu1 %v1461_v5  ;;  %1149 = vmatprep.mubr.msk.f32.mxu1 %vm1385_vm0, %v1386_v8 }
  0x3a   : > { %1258 = vmatprep.subr.bf16.mxu1 %v1384_v2 }
  0x3b   : > { %1236 = vmatpush3.bf16.msra.mxu0 %v1475_v10 }
  0x3c   : > { %1237 = vmatprep.subr.bf16.mxu0 %v1384_v2 }
  0x3d   : > { %1260 = vmatpush3.bf16.msra.mxu1 %v1475_v10 }
  0x3e   : > { %1261 = vmatprep.subr.bf16.mxu1 %v1384_v2 }
  0x3f   : > { %1239 = vmatpush3.bf16.msra.mxu0 %v1488_v14 }
  0x40   : > { %1240 = vmatprep.subr.bf16.mxu0 %v1384_v2 }
  0x41   : > { %1263 = vmatpush3.bf16.msra.mxu1 %v1488_v14 }
  0x42   : > { %1264 = vmatprep.subr.bf16.mxu1 %v1384_v2 }
  0x43   : > { %1242 = vmatpush3.bf16.msra.mxu0 %v1504_v19 }
  0x44   : > { %1243 = vmatprep.subr.bf16.mxu0 %v1384_v2 }
  0x45   : > { %1266 = vmatpush3.bf16.msra.mxu1 %v1504_v19 }
  0x46   : > { %1267 = vmatprep.subr.bf16.mxu1 %v1384_v2 }
  0x47   : > { %1245 = vmatpush3.bf16.msra.mxu0 %v1515_v23 }
  0x48   : > { %1246 = vmatprep.subr.bf16.mxu0 %v1384_v2 }
  0x49   : > { %1269 = vmatpush3.bf16.msra.mxu1 %v1515_v23 }
  0x4a   : > { %1270 = vmatprep.subr.bf16.mxu1 %v1384_v2 }
  0x4b   : > { %1248 = vmatpush3.bf16.msra.mxu0 %v1528_v27 }
  0x4c   : > { %1249 = vmatprep.subr.bf16.mxu0 %v1384_v2 }
  0x4d   : > { %1272 = vmatpush3.bf16.msra.mxu1 %v1528_v27 }
  0x4e   : > { %1273 = vmatprep.subr.bf16.mxu1 %v1384_v2 }
  0x4f   : > { %1251 = vmatpush3.bf16.msra.mxu0 %v1541_v31 }
  0x50   : > { %1252 = vmatprep.subr.bf16.mxu0 %v1384_v2 }
  0x51   : > { %1275 = vmatpush3.bf16.msra.mxu1 %v1541_v31 }
  0x52   : > { %1276 = vmatprep.subr.bf16.mxu1 %v1384_v2 }
  0x53   : > { %1254 = vmatpush3.bf16.msra.mxu0 %v1554_v35 }
  0x54   : > { %1279 = vmatprep.subr.bf16.mxu0 %v1384_v2 }
  0x55   : > { %1278 = vmatpush3.bf16.msra.mxu1 %v1554_v35 }
 0x109   : > { %v1045_v39 = vpop.f32.mrb[0].mxu0 }
 0x10a   : > { %v411_v40 = vadd.f32 %v1045_v39, %v916_v38  ;;  %v402_v41 = vpop.f32.mrb[1].mxu0 }
 0x10b   : > { %v505_v42 = vpop.f32.mrb[0].mxu1  ;;  %v403_v43 = vadd.f32 %v916_v38, %v402_v41  ;;  %v1046_v44 = vpop.f32.mrb[2].mxu0 }
 0x10c   : > { %v1081_v45 = vpop.f32.mrb[1].mxu1  ;;  %v414_v46 = vadd.f32 %v1046_v44, %v916_v38  ;;  %v405_v47 = vpop.f32.mrb[3].mxu0 }
 0x10d   : > { %v506_v48 = vadd.f32 %v505_v42, %v403_v43  ;;  %v406_v49 = vadd.f32 %v916_v38, %v405_v47 }
 0x10f   : > { %1343 = vtanh.f32 %v506_v48 }
 0x119   : > { %v1344_v50 = vpop.eup %1343 }
 0x11a   : > { %1115 = vmatmul.mubr.f32.vlgmr.msra.gmra.mrb[4].mxu0 %v1344_v50 }
 0x11b   : > { %1281 = vmatpush3.bf16.msra.mxu0 %v1461_v5  ;;  %1184 = vmatprep.mubr.msk.f32.mxu0 %vm1385_vm0, %v1386_v8  ;;  %v1356_v5 = vld [vmem:[%s1660_s4 + $0x28] sm:$0xff] (!%p927_p6)  }
 0x11c   : > { %1282 = vmatprep.subr.bf16.mxu0 %v1384_v2 }
 0x11f   : > { %1284 = vmatpush3.bf16.msra.mxu0 %v1475_v10 }
 0x120   : > { %1285 = vmatprep.subr.bf16.mxu0 %v1384_v2 }
 0x123   : > { %1287 = vmatpush3.bf16.msra.mxu0 %v1488_v14 }
 0x124   : > { %1288 = vmatprep.subr.bf16.mxu0 %v1384_v2 }
 0x127   : > { %1290 = vmatpush3.bf16.msra.mxu0 %v1504_v19 }
 0x128   : > { %1291 = vmatprep.subr.bf16.mxu0 %v1384_v2 }
 0x12b   : > { %1293 = vmatpush3.bf16.msra.mxu0 %v1515_v23 }
 0x12c   : > { %1294 = vmatprep.subr.bf16.mxu0 %v1384_v2 }
 0x12f   : > { %1296 = vmatpush3.bf16.msra.mxu0 %v1528_v27 }
 0x130   : > { %1297 = vmatprep.subr.bf16.mxu0 %v1384_v2 }
 0x133   : > { %1299 = vmatpush3.bf16.msra.mxu0 %v1541_v31 }
 0x134   : > { %1300 = vmatprep.subr.bf16.mxu0 %v1384_v2  ;;  %v1353_v2 = vld [vmem:[%s1660_s4 + $0x10] sm:$0xff] (!%p927_p6)  }
 0x137   : > { %1302 = vmatpush3.bf16.msra.mxu0 %v1554_v35 }
 0x138   : > { %1187 = vmatprep.subr.bf16.mxu0 (!%p927_p6), %v1387_v0 }
 0x1ed   : > { %v578_v51 = vpop.f32.mrb[4].mxu0 }
 0x1ee   : > { %v579_v52 = vadd.f32 %v578_v51, %v406_v49  ;;  %v1116_v53 = vpop.f32.mrb[5].mxu0 }
 0x1f0   : > { %1345 = vtanh.f32 %v579_v52 }
 0x1fa   : > { %v1346_v54 = vpop.eup %1345 }
 0x1fb   : > { %1150 = vmatmul.mubr.f32.vlgmr.msra.gmra.mrb[2].mxu1 %v1346_v54 }
 0x2ce   : > { %v651_v55 = vpop.f32.mrb[2].mxu1 }
 0x2cf   : > { %v652_v56 = vadd.f32 %v651_v55, %v411_v40  ;;  %v1151_v57 = vpop.f32.mrb[3].mxu1 }
 0x2d1   : > { %1347 = vtanh.f32 %v652_v56 }
 0x2db   : > { %v1348_v58 = vpop.eup %1347 }
 0x2dc   : > { %1185 = vmatmul.mubr.f32.vlgmr.msra.gmra.mrb[6].mxu0 %v1348_v58 }
 0x2dd   : > { %1188 = vmatpush3.bf16.msra.mxu0 (!%p927_p6), %v1351_v63  ;;  %1203 = vmatprep.mubr.msk.bf16.mxu0 (!%p927_p6), %vm1388_vm1, %v1387_v0 }
 0x2de   : > { %1189 = vmatprep.subr.bf16.mxu0 (!%p927_p6), %v1387_v0 }
 0x2e1   : > { %1190 = vmatpush3.bf16.msra.mxu0 (!%p927_p6), %v1352_v1 }
 0x2e2   : > { %1191 = vmatprep.subr.bf16.mxu0 (!%p927_p6), %v1387_v0 }
 0x2e5   : > { %1192 = vmatpush3.bf16.msra.mxu0 (!%p927_p6), %v1353_v2 }
 0x2e6   : > { %1193 = vmatprep.subr.bf16.mxu0 (!%p927_p6), %v1387_v0 }
 0x2e9   : > { %1194 = vmatpush3.bf16.msra.mxu0 (!%p927_p6), %v1354_v3 }
 0x2ea   : > { %1195 = vmatprep.subr.bf16.mxu0 (!%p927_p6), %v1387_v0 }
 0x2ed   : > { %1196 = vmatpush3.bf16.msra.mxu0 (!%p927_p6), %v1355_v4 }
 0x2ee   : > { %1197 = vmatprep.subr.bf16.mxu0 (!%p927_p6), %v1387_v0 }
 0x2f1   : > { %1198 = vmatpush3.bf16.msra.mxu0 (!%p927_p6), %v1356_v5 }
 0x2f2   : > { %1199 = vmatprep.subr.bf16.mxu0 (!%p927_p6), %v1387_v0 }
 0x2f5   : > { %1200 = vmatpush3.bf16.msra.mxu0 (!%p927_p6), %v1357_v6 }
 0x2f6   : > { %1201 = vmatprep.subr.bf16.mxu0 (!%p927_p6), %v1387_v0 }
 0x2f9   : > { %1202 = vmatpush3.bf16.msra.mxu0 (!%p927_p6), %v1358_v7 }
 0x3af   : > { %v724_v59 = vpop.f32.mrb[6].mxu0 }
 0x3b0   : > { %v725_v60 = vadd.f32 %v724_v59, %v414_v46  ;;  %v1186_v61 = vpop.f32.mrb[7].mxu0 }
 0x3b2   : > { %1349 = vtanh.f32 %v725_v60 }
 0x3b7   : > { %733 = sbr.rel (%p927_p6) target bundleno = 1174 (0x496), region = 52 }
 0x3bc   : > { %v1350_v62 = vpop.eup %1349 }
 0x3bd   : > { %729 = vst [vmem:[#allocation2] sm:$0xff] %v1350_v62  ;;  %v734_v8 = vpack.c.bf16 (!%p927_p6), %v1350_v62, %v1350_v62 }
 0x3bf   : > { %1204 = vmatmul.mubr.bf16.vlgmr.msra.gmra.mrb[0].mxu0 %v734_v8 }
 0x492   : > { %v840_v10 = vpop.f32.mrb[0].mxu0 }
 0x493   : > { %v841_v11 = vadd.f32 %v928_v9, %v840_v10  ;;  %v1205_v12 = vpop.f32.mrb[1].mxu0 }
 0x494   : > { %v843_v13 = vpop.f32.mrb[2].mxu0 }
 0x495   : > { %846 = vst [vmem:[%s1662_s6] sm:$0xff] %v841_v11  ;;  %v1206_v14 = vpop.f32.mrb[3].mxu0 }
 0x496 PF: > { %s16_s23 = sadd.s32 1, %s1381_s23   ;;  %s1663_s21 = smov %s1377_s22 }
 0x497   : > { %p13_p7 = scmp.ge.s32.totalorder %s16_s23, 4   ;;  %s1664_s22 = smov %s1666_s24 }
 0x499   :  { %15 = sbr.rel (!%p13_p7) target bundleno = 2 (0x2), region = 85 }

</bundles_post_ra>
